<compile_context>
chip_gen: v7x
topology: tpu7x:2x2x1
jax: 0.10.0
libtpu: 0.0.40
codegen_flags: <defaults>
</compile_context>

<pallas_src>
import functools

import jax
import jax.numpy as jnp
from jax.experimental import pallas as pl
from jax.experimental.pallas import tpu as pltpu


_LANES = 128
_TARGET_BLOCK_BYTES = 4 << 20  # ~4 MiB per input block per grid step


def _round_up(x, m):
    return (x + m - 1) // m * m


# -----------------------------------------------------------------------------
# Cross-entropy (mean over rows), logits [N, C], labels [N] int.
# Tiled over rows; scalar sum accumulated in SMEM (tiny), divided at the end.
# -----------------------------------------------------------------------------
def _cross_entropy_kernel(logits_ref, labels_ref, out_ref, *,
                          n_valid, tile_n, need_mask):
    i = pl.program_id(0)

    @pl.when(i == 0)
    def _():
        out_ref[0, 0] = jnp.float32(0.0)

    x = logits_ref[...].astype(jnp.float32)              # (tile_n, C)
    lab = labels_ref[...]                                 # (tile_n, 1) int32

    m = jnp.max(x, axis=-1, keepdims=True)
    lse = jnp.log(jnp.sum(jnp.exp(x - m), axis=-1, keepdims=True)) + m
    col = jax.lax.broadcasted_iota(jnp.int32, x.shape, 1)
    picked = jnp.sum(jnp.where(col == lab, x, 0.0), axis=-1, keepdims=True)
    per_row = lse - picked                                 # (tile_n, 1)

    if need_mask:
        # NOTE: keep this as a `where` *select* (not multiply-by-0 masking) so
        # NaN/Inf produced from garbage padded rows cannot propagate.
        row = jax.lax.broadcasted_iota(jnp.int32, per_row.shape, 0) + i * tile_n
        per_row = jnp.where(row < n_valid, per_row, 0.0)

    out_ref[0, 0] += jnp.sum(per_row)

    @pl.when(i == pl.num_programs(0) - 1)
    def _():
        out_ref[0, 0] = out_ref[0, 0] / jnp.float32(n_valid)


def _cross_entropy_mean_jnp(logits, labels):
    x = logits.astype(jnp.float32)
    lse = jax.scipy.special.logsumexp(x, axis=-1)
    picked = jnp.take_along_axis(x, labels.astype(jnp.int32)[:, None], axis=-1)[:, 0]
    return jnp.mean(lse - picked)


def cross_entropy_mean(logits, labels, *, max_tile_n=512):
    """logits: (N, C) float, labels: (N,) int class indices -> mean CE (f32)."""
    n, c = logits.shape

    if n * c <= 4096:
        # Tiny classifier head: a pallas_call launch costs a few microseconds
        # of pure overhead; stay in XLA (fuses into the surrounding jit).
        return _cross_entropy_mean_jnp(logits, labels)

    labels2d = labels.astype(jnp.int32).reshape(n, 1)
    itemsize = jnp.dtype(logits.dtype).itemsize

    # Guard the VMEM footprint against large C: keep a (tile_n, C) block (x2
    # pipeline buffers) comfortably under the scoped VMEM budget.
    block_budget = 4 << 20
    tile_cap = max(8, (block_budget // max(1, c * itemsize)) // 8 * 8)
    tile_n = min(max_tile_n, tile_cap, _round_up(n, 8))
    num_tiles = pl.cdiv(n, tile_n)
    need_mask = (n % tile_n) != 0
    # TODO(synk): for extremely large C (where even a tile_n=8 block exceeds
    # VMEM) tile C with an online logsumexp over a second grid axis.

    out = pl.pallas_call(
        functools.partial(_cross_entropy_kernel,
                          n_valid=n, tile_n=tile_n, need_mask=need_mask),
        out_shape=jax.ShapeDtypeStruct((1, 1), jnp.float32),
        grid=(num_tiles,),
        in_specs=[
            pl.BlockSpec((tile_n, c), lambda i: (i, 0)),
            pl.BlockSpec((tile_n, 1), lambda i: (i, 0)),
        ],
        out_specs=pl.BlockSpec(memory_space=pltpu.MemorySpace.SMEM),
        # Resident SMEM accumulator (out_ref[0,0] +=) requires a sequential
        # ("arbitrary") grid axis; do NOT flip this to "parallel" as written.
        compiler_params=pltpu.CompilerParams(dimension_semantics=("arbitrary",)),
    )(logits, labels2d)
    return out[0, 0]


# -----------------------------------------------------------------------------
# SmoothL1 (beta=1.0) partial sums over a lane-dense (rows, 128) slab.
# Each grid program handles one (tile_rows, 128) tile and writes an (8, 128)
# partial-sum block; "parallel" grid axis -> megacore-shardable on v7x.
# Final tiny reduce + divide happens in XLA outside the kernel.
# -----------------------------------------------------------------------------
def _smooth_l1_partial_kernel(f_ref, x_ref, out_ref, *, rows_valid, need_mask):
    d = f_ref[...].astype(jnp.float32) - x_ref[...].astype(jnp.float32)
    ad = jnp.abs(d)
    # Branch-free Huber (beta=1): q = min(|d|,1); v = q*(|d| - q/2).
    #   |d| < 1 : q=|d| -> 0.5*d^2   ;   |d| >= 1 : q=1 -> |d| - 0.5
    q = jnp.minimum(ad, 1.0)
    v = q * (ad - 0.5 * q)

    if need_mask:
        # NOTE: keep this as a `where` *select* (not multiply-by-0 masking) so
        # NaN/Inf from garbage padded rows cannot propagate.
        tile_rows = v.shape[0]
        row = (jax.lax.broadcasted_iota(jnp.int32, v.shape, 0)
               + pl.program_id(0) * tile_rows)
        v = jnp.where(row < rows_valid, v, 0.0)

    r = v.shape[0]
    if r % 32 == 0:
        # 4 independent accumulation chains -> the 4 VALU slots can overlap the
        # reduction with the elementwise work (breaks the serial vadd chain).
        p = v.reshape(r // 32, 4, 8, _LANES).sum(axis=0)   # (4, 8, 128)
        out_ref[...] = (p[0] + p[1]) + (p[2] + p[3])
    else:
        out_ref[...] = v.reshape(r // 8, 8, _LANES).sum(axis=0)


def _smooth_l1_sum_jnp(a, b):
    d = a.astype(jnp.float32) - b.astype(jnp.float32)
    ad = jnp.abs(d)
    q = jnp.minimum(ad, 1.0)
    return jnp.sum(q * (ad - 0.5 * q))


def smooth_l1_mean(fake_imgs, imgs):
    """Elementwise SmoothL1 (beta=1.0), mean over all elements (f32 scalar)."""
    assert fake_imgs.shape == imgs.shape
    total = fake_imgs.size
    flat_f = fake_imgs.reshape(-1)   # free reshape, native dtype
    flat_x = imgs.reshape(-1)

    rows = total // _LANES
    rem = total - rows * _LANES

    if rows < 8:
        # Too small for a kernel launch to pay off.
        return _smooth_l1_sum_jnp(flat_f, flat_x) / jnp.float32(total)

    # Lane-dense main slab: total//128 rows. When total % 128 == 0 (the common
    # NCHW case) this is a zero-copy reshape; the ragged <128-element tail is
    # handled in plain XLA below (no full-tensor jnp.pad copy is ever emitted).
    f = flat_f[: rows * _LANES].reshape(rows, _LANES)
    x = flat_x[: rows * _LANES].reshape(rows, _LANES)

    itemsize = jnp.dtype(fake_imgs.dtype).itemsize
    # Dtype-aware sublane alignment; 32 also enables the 4-way fold.
    if rows >= 32:
        align = 32
    elif itemsize <= 2 and rows >= 16:
        align = 16
    else:
        align = 8

    # ~4 MiB per input block: 8192 rows f32 / 16384 rows bf16 per grid step.
    max_tile_rows = max(align,
                        (_TARGET_BLOCK_BYTES // (_LANES * itemsize)) // align * align)
    # Clamp so the "parallel" grid keeps >= 2 tiles when possible (v7x 2 TCs).
    tile_rows = min(max_tile_rows, _round_up(pl.cdiv(rows, 2), align))
    num_tiles = pl.cdiv(rows, tile_rows)
    need_mask = (rows % tile_rows) != 0

    block_bytes = tile_rows * _LANES * itemsize
    out_bytes = num_tiles * 8 * _LANES * 4

    partials = pl.pallas_call(
        functools.partial(_smooth_l1_partial_kernel,
                          rows_valid=rows, need_mask=need_mask),
        out_shape=jax.ShapeDtypeStruct((num_tiles * 8, _LANES), jnp.float32),
        grid=(num_tiles,),
        in_specs=[
            pl.BlockSpec((tile_rows, _LANES), lambda i: (i, 0)),
            pl.BlockSpec((tile_rows, _LANES), lambda i: (i, 0)),
        ],
        out_specs=pl.BlockSpec((8, _LANES), lambda i: (i, 0)),
        compiler_params=pltpu.CompilerParams(
            dimension_semantics=("parallel",),
            # 2 inputs x 2 pipeline buffers at up to ~4 MiB/block; lift the
            # scoped VMEM limit explicitly so the same tiling also compiles on
            # v5e (16 MiB default scoped VMEM). Well under every chip's
            # physical VMEM (>= 64 MiB).
            vmem_limit_bytes=int(4 * block_bytes + (8 << 20)),
        ),
        cost_estimate=pl.CostEstimate(
            flops=8 * rows * _LANES,
            transcendentals=0,
            bytes_accessed=2 * rows * _LANES * itemsize + out_bytes,
        ),
    )(f, x)

    # Final tiny reduction (num_tiles * 4 KiB) done in XLA outside the kernel.
    main_sum = jnp.sum(partials)
    if rem:
        # <128-element ragged tail, handled in plain XLA; contributes the exact
        # per-element loss, and the mean divides by the true element count.
        main_sum = main_sum + _smooth_l1_sum_jnp(flat_f[rows * _LANES:],
                                                 flat_x[rows * _LANES:])
    return main_sum / jnp.float32(total)


# -----------------------------------------------------------------------------
# Module-equivalent wrapper
# -----------------------------------------------------------------------------
class CycleGANLossPallas:
    """Pallas equivalent of CycleGANLoss.forward (no learnable parameters)."""

    def __init__(self):
        self.lambda_ = 100.0
        self._gan_fn = jax.jit(self._gan_impl)
        self._discr_fn = jax.jit(cross_entropy_mean)

    def _gan_impl(self, pred_imgs, labels, fake_imgs, imgs):
        gan_loss = cross_entropy_mean(pred_imgs, labels)
        cc_loss = self.lambda_ * smooth_l1_mean(fake_imgs, imgs)
        return gan_loss + cc_loss, gan_loss, cc_loss

    def __call__(self, mode, pred_imgs, labels, fake_imgs, imgs):
        if mode == "GAN":
            # Returns device scalars (total, gan_loss, cc_loss). The PyTorch
            # module calls .item() on the last two eagerly; here that host sync
            # is deferred to the caller so the whole GAN path stays one jit'ed
            # dispatch with no blocking device->host copies.
            return self._gan_fn(pred_imgs, labels, fake_imgs, imgs)
        elif mode == "Discr":
            return self._discr_fn(pred_imgs, labels)
        else:
            raise ValueError(f"unknown mode: {mode}")


if __name__ == "__main__":
    key = jax.random.PRNGKey(0)
    k1, k2, k3, k4, k5, k6, k7, k8 = jax.random.split(key, 8)

    # ---- pure-JAX references -------------------------------------------------
    def ref_ce(logits, lab):
        lse = jax.scipy.special.logsumexp(logits.astype(jnp.float32), axis=-1)
        picked = jnp.take_along_axis(logits.astype(jnp.float32),
                                     lab[:, None], axis=-1)[:, 0]
        return jnp.mean(lse - picked)

    def ref_sl1(a, b):
        d = a.astype(jnp.float32) - b.astype(jnp.float32)
        ad = jnp.abs(d)
        return jnp.mean(jnp.where(ad < 1.0, 0.5 * d * d, ad - 0.5))

    # ---- main module-shaped demo ----------------------------------------------
    N, C_CLS = 8, 4                 # classifier logits / labels
    B, C, H, W = 2, 4, 16, 16       # images

    pred_imgs = jax.random.normal(k1, (N, C_CLS), dtype=jnp.float32)
    labels = jax.random.randint(k2, (N,), 0, C_CLS, dtype=jnp.int32)
    fake_imgs = jax.random.normal(k3, (B, C, H, W), dtype=jnp.float32)
    imgs = jax.random.normal(k4, (B, C, H, W), dtype=jnp.float32)

    loss_mod = CycleGANLossPallas()

    total_gan_loss, gan_loss, cc_loss = loss_mod(
        "GAN", pred_imgs, labels, fake_imgs, imgs)
    jax.block_until_ready(total_gan_loss)

    discr_loss = loss_mod("Discr", pred_imgs, labels, fake_imgs, imgs)
    jax.block_until_ready(discr_loss)

    ref_gan = ref_ce(pred_imgs, labels)
    ref_cc = 100.0 * ref_sl1(fake_imgs, imgs)
    assert jnp.allclose(gan_loss, ref_gan, rtol=1e-5, atol=1e-5)
    assert jnp.allclose(cc_loss, ref_cc, rtol=1e-5, atol=1e-5)
    assert jnp.allclose(total_gan_loss, ref_gan + ref_cc, rtol=1e-5, atol=1e-5)
    assert jnp.allclose(discr_loss, ref_gan, rtol=1e-5, atol=1e-5)

    # ---- exercise the Pallas CE kernel (masked edge block, multi-tile) --------
    N2, C2 = 600, 16
    big_logits = jax.random.normal(k5, (N2, C2), dtype=jnp.float32)
    big_labels = jax.random.randint(k6, (N2,), 0, C2, dtype=jnp.int32)
    ce_pallas = cross_entropy_mean(big_logits, big_labels)
    jax.block_until_ready(ce_pallas)
    assert jnp.allclose(ce_pallas, ref_ce(big_logits, big_labels),
                        rtol=1e-5, atol=1e-5)

    # ---- exercise the SmoothL1 ragged-tail + masked-tile path -----------------
    a_r = jax.random.normal(k7, (2, 3, 16, 17), dtype=jnp.float32)   # 1632 elems
    b_r = jax.random.normal(k8, (2, 3, 16, 17), dtype=jnp.float32)
    sl1_r = smooth_l1_mean(a_r, b_r)
    jax.block_until_ready(sl1_r)
    assert jnp.allclose(sl1_r, ref_sl1(a_r, b_r), rtol=1e-5, atol=1e-5)

    # ---- exercise the 32-aligned 4-way fold path -------------------------------
    a_b = jax.random.normal(k7, (4, 4, 32, 32), dtype=jnp.float32)   # 16384 elems
    b_b = jax.random.normal(k8, (4, 4, 32, 32), dtype=jnp.float32)
    sl1_b = smooth_l1_mean(a_b, b_b)
    jax.block_until_ready(sl1_b)
    assert jnp.allclose(sl1_b, ref_sl1(a_b, b_b), rtol=1e-5, atol=1e-5)

    print("KERNEL_OK")
</pallas_src>

<mosaic_0001>
module attributes {stable_mosaic.version = 11 : i64} {
  func.func @_smooth_l1_partial_kernel(%arg0: i32, %arg1: memref<8x128xf32, #tpu.memory_space<vmem>>, %arg2: memref<8x128xf32, #tpu.memory_space<vmem>>, %arg3: memref<8x128xf32, #tpu.memory_space<vmem>>) attributes {dimension_semantics = [#tpu.dimension_semantics<parallel>], iteration_bounds = array<i64: 2>, scalar_prefetch = 0 : i64, scratch_operands = 0 : i64, tpu.core_type = #tpu.core_type<tc>, window_params = [{transform_indices = @transform_0, window_bounds = array<i64: 8, 128>}, {transform_indices = @transform_1, window_bounds = array<i64: 8, 128>}, {transform_indices = @transform_2, window_bounds = array<i64: 8, 128>}]} {
    %c0 = arith.constant 0 : index
    %c0_0 = arith.constant 0 : index
    %0 = vector.load %arg1[%c0, %c0_0] : memref<8x128xf32, #tpu.memory_space<vmem>>, vector<8x128xf32>
    %c0_1 = arith.constant 0 : index
    %c0_2 = arith.constant 0 : index
    %1 = vector.load %arg2[%c0_1, %c0_2] : memref<8x128xf32, #tpu.memory_space<vmem>>, vector<8x128xf32>
    %2 = arith.subf %0, %1 : vector<8x128xf32>
    %3 = math.absf %2 : vector<8x128xf32>
    %cst = arith.constant 1.000000e+00 : f32
    %4 = vector.broadcast %cst : f32 to vector<8x128xf32>
    %5 = arith.minimumf %3, %4 : vector<8x128xf32>
    %cst_3 = arith.constant 5.000000e-01 : f32
    %6 = vector.broadcast %cst_3 : f32 to vector<8x128xf32>
    %7 = arith.mulf %6, %5 : vector<8x128xf32>
    %8 = arith.subf %3, %7 : vector<8x128xf32>
    %9 = arith.mulf %5, %8 : vector<8x128xf32>
    %10 = vector.shape_cast %9 : vector<8x128xf32> to vector<1x8x128xf32>
    %cst_4 = arith.constant dense<0.000000e+00> : vector<8x128xf32>
    %11 = vector.multi_reduction <add>, %10, %cst_4 [0] : vector<1x8x128xf32> to vector<8x128xf32>
    %c0_5 = arith.constant 0 : index
    %c0_6 = arith.constant 0 : index
    %12 = vector.load %arg3[%c0_5, %c0_6] : memref<8x128xf32, #tpu.memory_space<vmem>>, vector<8x128xf32>
    tpu.vector_store %arg3[%c0_5, %c0_6], %11 {strides = array<i32>} : memref<8x128xf32, #tpu.memory_space<vmem>>, vector<8x128xf32>,
    return
  }
  func.func @transform_0(%arg0: i32) -> (i32, i32) {
    %c0_i32 = arith.constant 0 : i32
    %c0_i32_0 = arith.constant 0 : i32
    return %arg0, %c0_i32 : i32, i32
  }
  func.func @transform_1(%arg0: i32) -> (i32, i32) {
    %c0_i32 = arith.constant 0 : i32
    %c0_i32_0 = arith.constant 0 : i32
    return %arg0, %c0_i32 : i32, i32
  }
  func.func @transform_2(%arg0: i32) -> (i32, i32) {
    %c0_i32 = arith.constant 0 : i32
    %c0_i32_0 = arith.constant 0 : i32
    return %arg0, %c0_i32 : i32, i32
  }
}

</mosaic_0001>

<bundles_post_ra>
// kernel: _gan_impl.1
= control target key start
LH: loop header
LB: loop body
LE: loop exit
PB: predicated region body
PF: predicated region fallthrough
CT: control target
= control target key end

     0   :  { %s253_s9 = smov 0   ;;  %s281_s0 = inlined_call_operand.vmem [shape: f32[16,128], index: 0, kind: input, shape index: {}]   ;;  %s282_s1 = inlined_call_operand.vmem [shape: f32[16,128], index: 1, kind: input, shape index: {}]   ;;  %s283_s2 = inlined_call_operand.vmem [shape: f32[16,128], index: 2, kind: output, shape index: {}]  }
   0x1 LB: > { %s231_s10 = sadd.s32 4294967295, %s255_s9   ;;  %p235_p0 = scmp.ge.s32.totalorder %s255_s9, 1  ;;  %s255_s9 = sphi %s253_s9, %s12_s9  }
   0x2   : > { %p120_p1 = scmp.lt.s32.totalorder %s255_s9, 3 }
   0x4   : > { %p121_p2 = pnand %p235_p0, %p120_p1 }
   0x5   : > { %p144_p3 = scmp.lt.s32.totalorder (!%p121_p2), %s231_s10, 1 }
   0x6   : > { %124 = sbr.rel (%p121_p2) target bundleno = 31 (0x1f), region = 28 }
   0xd   : > { %s285_s10 = smov (!%p144_p3, %s231_s10), 1 }
   0xe   : > { %s236_s11 = sshll.u32 %s285_s10, 3 }
   0xf   : > { %s147_s14 = scalar_lea.vmem %s281_s0, %s236_s11  ;;  %s151_s17 = scalar_lea.vmem %s282_s1, %s236_s11 }
  0x10   : > { %v156_v0 = vld [vmem:[%s147_s14] sm:$0xff]  ;;  %s155_s20 = scalar_lea.vmem %s283_s2, %s236_s11 }
  0x11   : > { %v157_v1 = vld [vmem:[%s151_s17] sm:$0xff] }
  0x12   : > { %v158_v2 = vsub.f32 %v156_v0, %v157_v1 }
  0x14   : > { %v159_v3 = vand.u32 2147483647, %v158_v2 }
  0x16   : > { %v160_v4 = vmin.f32 %v159_v3, 1.0 }
  0x18   : > { %v161_v5 = vmul.f32 0.5, %v160_v4 }
  0x1a   : > { %v162_v6 = vsub.f32 %v159_v3, %v161_v5 }
  0x1c   : > { %v163_v7 = vmul.f32 %v162_v6, %v160_v4 }
  0x1e   : > { %165 = vst [vmem:[%s155_s20] sm:$0xff] %v163_v7 }
  0x1f PF: > { %s12_s9 = sadd.s32 1, %s255_s9  }
  0x20   : > { %p9_p4 = scmp.ge.s32.totalorder %s12_s9, 4  }
  0x22   :  { %11 = sbr.rel (!%p9_p4) target bundleno = 1 (0x1), region = 61 }

</bundles_post_ra>
